<compile_context>
chip_gen: v7x
topology: tpu7x:2x2x1
jax: 0.10.0
libtpu: 0.0.40
codegen_flags: <defaults>
</compile_context>

<pallas_src>
import jax
import jax.numpy as jnp
from jax.experimental import pallas as pl
from jax.experimental.pallas import tpu as pltpu


def dueling_q_kernel(x_ref, w1_ref, b1_ref, w2_ref, b2_ref, q_ref):
    """Fused dueling head: Q = V + (A - mean(A)) with two fused matmuls.

    w1 = [w1v | w1a]              (H, 2H)
    w2 = [[w2v, 0], [0, w2a]]     (2H, 1+A)   (block-diagonal)
    """
    x = x_ref[...]

    # ---- fused first layer: both streams in one MXU pass ----
    h = jnp.dot(x, w1_ref[...], preferred_element_type=jnp.float32) + b1_ref[...]
    h = jnp.maximum(h, 0.0)                      # ReLU (Dropout = identity in eval)

    # ---- fused second layer: [v | a] in one matmul ----
    va = jnp.dot(h, w2_ref[...], preferred_element_type=jnp.float32) + b2_ref[...]
    v = va[:, :1]                                # (TB, 1)  value
    a = va[:, 1:]                                # (TB, A)  advantages (real A cols only)

    a_mean = jnp.mean(a, axis=1, keepdims=True)  # mean over the true action dim
    q_ref[...] = (v + (a - a_mean)).astype(q_ref.dtype)


def pack_params(p):
    """Fuse the per-stream nn.Linear weights into two packed operands each."""
    H = p["w1v"].shape[0]
    A = p["w2a"].shape[1]
    w1 = jnp.concatenate([p["w1v"], p["w1a"]], axis=1)            # (H, 2H)
    b1 = jnp.concatenate([p["b1v"], p["b1a"]], axis=1)            # (1, 2H)
    w2 = jnp.zeros((2 * H, 1 + A), jnp.float32)
    w2 = w2.at[:H, :1].set(p["w2v"]).at[H:, 1:].set(p["w2a"])     # block-diag (2H, 1+A)
    b2 = jnp.concatenate([p["b2v"], p["b2a"]], axis=1)            # (1, 1+A)
    return w1, b1, w2, b2


def dueling_q_head(x, packed):
    """x: (B, hidden_dim) float32 -> Q: (B, action_dim) float32."""
    w1, b1, w2, b2 = packed
    B, H = x.shape
    A = w2.shape[1] - 1

    # Batch tiling / padding: keep full (8,128) sublane tiles (unmasked vld/vst).
    # Small batches -> a single grid point; large replay batches -> 128-row tiles
    # sharded across TensorCores via the parallel grid axis (helps v7x).
    if B <= 128:
        TB = max(8, ((B + 7) // 8) * 8)
    else:
        TB = 128
    B_pad = ((B + TB - 1) // TB) * TB
    if B_pad != B:
        x = jnp.pad(x, ((0, B_pad - B), (0, 0)))
    grid = (B_pad // TB,)

    flops = 2 * B_pad * H * (2 * H) + 2 * B_pad * (2 * H) * (1 + A)
    bytes_accessed = 4 * (x.size + w1.size + b1.size + w2.size + b2.size + B_pad * A)

    q = pl.pallas_call(
        dueling_q_kernel,
        out_shape=jax.ShapeDtypeStruct((B_pad, A), jnp.float32),
        grid_spec=pltpu.PrefetchScalarGridSpec(
            num_scalar_prefetch=0,
            grid=grid,
            in_specs=[
                pl.BlockSpec((TB, H), lambda i: (i, 0)),          # x rows
                pl.BlockSpec((H, 2 * H), lambda i: (0, 0)),       # fused W1 (resident)
                pl.BlockSpec((1, 2 * H), lambda i: (0, 0)),       # fused b1
                pl.BlockSpec((2 * H, 1 + A), lambda i: (0, 0)),   # block-diag W2
                pl.BlockSpec((1, 1 + A), lambda i: (0, 0)),       # fused b2
            ],
            out_specs=pl.BlockSpec((TB, A), lambda i: (i, 0)),
        ),
        compiler_params=pltpu.CompilerParams(
            dimension_semantics=("parallel",)),
        cost_estimate=pl.CostEstimate(
            flops=flops, transcendentals=0, bytes_accessed=bytes_accessed),
    )(x, w1, b1, w2, b2)
    return q[:B]


def init_params(key, hidden_dim, action_dim):
    """Deterministic synthetic init, nn.Linear-compatible (W stored as (in, out))."""
    ks = jax.random.split(key, 4)

    def lin(k, fan_in, fan_out):
        bound = 1.0 / jnp.sqrt(fan_in)
        kw, kb = jax.random.split(k)
        w = jax.random.uniform(kw, (fan_in, fan_out), jnp.float32, -bound, bound)
        b = jax.random.uniform(kb, (1, fan_out), jnp.float32, -bound, bound)
        return w, b

    w1v, b1v = lin(ks[0], hidden_dim, hidden_dim)
    w2v, b2v = lin(ks[1], hidden_dim, 1)
    w1a, b1a = lin(ks[2], hidden_dim, hidden_dim)
    w2a, b2a = lin(ks[3], hidden_dim, action_dim)
    return dict(w1v=w1v, b1v=b1v, w2v=w2v, b2v=b2v,
                w1a=w1a, b1a=b1a, w2a=w2a, b2a=b2a)


def reference_q(x, p):
    """Pure-JAX reference (unfused, matches the PyTorch module)."""
    hv = jnp.maximum(x @ p["w1v"] + p["b1v"], 0.0)
    v = hv @ p["w2v"] + p["b2v"]
    ha = jnp.maximum(x @ p["w1a"] + p["b1a"], 0.0)
    a = ha @ p["w2a"] + p["b2a"]
    return v + (a - a.mean(axis=1, keepdims=True))


if __name__ == "__main__":
    HIDDEN = 128     # hidden_dim (module default)
    ACTIONS = 4      # action_dim

    key = jax.random.PRNGKey(0)
    k_x, k_p, k_x2 = jax.random.split(key, 3)

    params = init_params(k_p, HIDDEN, ACTIONS)
    packed = pack_params(params)

    # Inference-style tiny batch (act()): exercises batch padding to 8 rows.
    x_small = jax.random.normal(k_x, (2, HIDDEN), dtype=jnp.float32)
    q_small = jax.block_until_ready(dueling_q_head(x_small, packed))
    assert q_small.shape == (2, ACTIONS)
    assert jnp.allclose(q_small, reference_q(x_small, params),
                        atol=1e-3, rtol=1e-3), "small-batch mismatch vs reference"

    # Training-style replay batch: exercises the 128-row tiled parallel grid path.
    x_big = jax.random.normal(k_x2, (200, HIDDEN), dtype=jnp.float32)
    q_big = jax.block_until_ready(dueling_q_head(x_big, packed))
    assert q_big.shape == (200, ACTIONS)
    assert jnp.allclose(q_big, reference_q(x_big, params),
                        atol=1e-3, rtol=1e-3), "large-batch mismatch vs reference"

    print("KERNEL_OK")
</pallas_src>

<mosaic_0001>
module attributes {stable_mosaic.version = 11 : i64} {
  func.func @dueling_q_kernel(%arg0: i32, %arg1: memref<8x128xf32, #tpu.memory_space<vmem>>, %arg2: memref<128x256xf32, #tpu.memory_space<vmem>>, %arg3: memref<1x256xf32, #tpu.memory_space<vmem>>, %arg4: memref<256x5xf32, #tpu.memory_space<vmem>>, %arg5: memref<1x5xf32, #tpu.memory_space<vmem>>, %arg6: memref<8x4xf32, #tpu.memory_space<vmem>>) attributes {dimension_semantics = [#tpu.dimension_semantics<parallel>], iteration_bounds = array<i64: 1>, scalar_prefetch = 0 : i64, scratch_operands = 0 : i64, tpu.core_type = #tpu.core_type<tc>, window_params = [{transform_indices = @transform_0, window_bounds = array<i64: 8, 128>}, {pipeline_mode = #tpu.pipeline_mode<synchronous>, transform_indices = @transform_1, window_bounds = array<i64: 128, 256>}, {pipeline_mode = #tpu.pipeline_mode<synchronous>, transform_indices = @transform_2, window_bounds = array<i64: 1, 256>}, {pipeline_mode = #tpu.pipeline_mode<synchronous>, transform_indices = @transform_3, window_bounds = array<i64: 256, 5>}, {pipeline_mode = #tpu.pipeline_mode<synchronous>, transform_indices = @transform_4, window_bounds = array<i64: 1, 5>}, {transform_indices = @transform_5, window_bounds = array<i64: 8, 4>}]} {
    %c0 = arith.constant 0 : index
    %c0_0 = arith.constant 0 : index
    %0 = vector.load %arg1[%c0, %c0_0] : memref<8x128xf32, #tpu.memory_space<vmem>>, vector<8x128xf32>
    %c0_1 = arith.constant 0 : index
    %c0_2 = arith.constant 0 : index
    %1 = vector.load %arg2[%c0_1, %c0_2] : memref<128x256xf32, #tpu.memory_space<vmem>>, vector<128x256xf32>
    %cst = arith.constant dense<0.000000e+00> : vector<8x256xf32>
    %2 = tpu.matmul %0, %1, %cst {dimension_numbers = #tpu.dot_dimension_numbers<[1], [0], [0], [1], [0, 0, 1, 1], [], []>} : vector<8x128xf32>, vector<128x256xf32>, vector<8x256xf32> -> vector<8x256xf32>
    %c0_3 = arith.constant 0 : index
    %c0_4 = arith.constant 0 : index
    %3 = vector.load %arg3[%c0_3, %c0_4] : memref<1x256xf32, #tpu.memory_space<vmem>>, vector<1x256xf32>
    %4 = vector.broadcast %3 : vector<1x256xf32> to vector<8x256xf32>
    %5 = arith.addf %2, %4 : vector<8x256xf32>
    %cst_5 = arith.constant 0.000000e+00 : f32
    %6 = vector.broadcast %cst_5 : f32 to vector<8x256xf32>
    %7 = arith.maximumf %5, %6 : vector<8x256xf32>
    %c0_6 = arith.constant 0 : index
    %c0_7 = arith.constant 0 : index
    %8 = vector.load %arg4[%c0_6, %c0_7] : memref<256x5xf32, #tpu.memory_space<vmem>>, vector<256x5xf32>
    %cst_8 = arith.constant dense<0.000000e+00> : vector<8x5xf32>
    %9 = tpu.matmul %7, %8, %cst_8 {dimension_numbers = #tpu.dot_dimension_numbers<[1], [0], [0], [1], [0, 0, 1, 1], [], []>} : vector<8x256xf32>, vector<256x5xf32>, vector<8x5xf32> -> vector<8x5xf32>
    %c0_9 = arith.constant 0 : index
    %c0_10 = arith.constant 0 : index
    %10 = vector.load %arg5[%c0_9, %c0_10] : memref<1x5xf32, #tpu.memory_space<vmem>>, vector<1x5xf32>
    %11 = vector.broadcast %10 : vector<1x5xf32> to vector<8x5xf32>
    %12 = arith.addf %9, %11 : vector<8x5xf32>
    %13 = vector.extract_strided_slice %12 {offsets = [0, 0], sizes = [8, 1], strides = [1, 1]} : vector<8x5xf32> to vector<8x1xf32>
    %14 = vector.extract_strided_slice %12 {offsets = [0, 1], sizes = [8, 4], strides = [1, 1]} : vector<8x5xf32> to vector<8x4xf32>
    %cst_11 = arith.constant dense<0.000000e+00> : vector<8xf32>
    %15 = vector.multi_reduction <add>, %14, %cst_11 [1] : vector<8x4xf32> to vector<8xf32>
    %16 = vector.shape_cast %15 : vector<8xf32> to vector<8x1xf32>
    %cst_12 = arith.constant 4.000000e+00 : f32
    %17 = vector.broadcast %cst_12 : f32 to vector<8x1xf32>
    %18 = arith.divf %16, %17 : vector<8x1xf32>
    %19 = vector.broadcast %18 : vector<8x1xf32> to vector<8x4xf32>
    %20 = arith.subf %14, %19 : vector<8x4xf32>
    %21 = vector.broadcast %13 : vector<8x1xf32> to vector<8x4xf32>
    %22 = arith.addf %21, %20 : vector<8x4xf32>
    %c0_13 = arith.constant 0 : index
    %c0_14 = arith.constant 0 : index
    %23 = vector.load %arg6[%c0_13, %c0_14] : memref<8x4xf32, #tpu.memory_space<vmem>>, vector<8x4xf32>
    tpu.vector_store %arg6[%c0_13, %c0_14], %22 {strides = array<i32>} : memref<8x4xf32, #tpu.memory_space<vmem>>, vector<8x4xf32>,
    return
  }
  func.func @transform_0(%arg0: i32) -> (i32, i32) {
    %c0_i32 = arith.constant 0 : i32
    %c0_i32_0 = arith.constant 0 : i32
    return %arg0, %c0_i32 : i32, i32
  }
  func.func @transform_1(%arg0: i32) -> (i32, i32) {
    %c0_i32 = arith.constant 0 : i32
    %c0_i32_0 = arith.constant 0 : i32
    %c0_i32_1 = arith.constant 0 : i32
    return %c0_i32, %c0_i32_0 : i32, i32
  }
  func.func @transform_2(%arg0: i32) -> (i32, i32) {
    %c0_i32 = arith.constant 0 : i32
    %c0_i32_0 = arith.constant 0 : i32
    %c0_i32_1 = arith.constant 0 : i32
    return %c0_i32, %c0_i32_0 : i32, i32
  }
  func.func @transform_3(%arg0: i32) -> (i32, i32) {
    %c0_i32 = arith.constant 0 : i32
    %c0_i32_0 = arith.constant 0 : i32
    %c0_i32_1 = arith.constant 0 : i32
    return %c0_i32, %c0_i32_0 : i32, i32
  }
  func.func @transform_4(%arg0: i32) -> (i32, i32) {
    %c0_i32 = arith.constant 0 : i32
    %c0_i32_0 = arith.constant 0 : i32
    %c0_i32_1 = arith.constant 0 : i32
    return %c0_i32, %c0_i32_0 : i32, i32
  }
  func.func @transform_5(%arg0: i32) -> (i32, i32) {
    %c0_i32 = arith.constant 0 : i32
    %c0_i32_0 = arith.constant 0 : i32
    return %arg0, %c0_i32 : i32, i32
  }
}

</mosaic_0001>

<bundles_post_ra>
// kernel: tpu_custom_call.1
= control target key start
LH: loop header
LB: loop body
LE: loop exit
PB: predicated region body
PF: predicated region fallthrough
CT: control target
= control target key end

     0   :  { %v377_v3 = vmov 0.0   ;;  %vm251_vm0 = vcmask 31744   ;;  %s614_s1 = inlined_call_operand.vmem [shape: f32[128,256], index: 1, kind: input, shape index: {}]   ;;  %s615_s3 = inlined_call_operand.vmem [shape: f32[256,5], index: 3, kind: input, shape index: {}]   ;;  %s616_s0 = inlined_call_operand.vmem [shape: f32[8,128], index: 0, kind: input, shape index: {}]   ;;  %s617_s2 = inlined_call_operand.vmem [shape: f32[1,256], index: 2, kind: input, shape index: {}]   ;;  %s618_s4 = inlined_call_operand.vmem [shape: f32[1,5], index: 4, kind: input, shape index: {}]   ;;  %s619_s5 = inlined_call_operand.vmem [shape: f32[8,4], index: 5, kind: output, shape index: {}]  }
   0x1   :  { %v22_v0 = vld [vmem:[%s614_s1 + $0x8] sm:$0xff]  ;;  %v24_v1 = vld [vmem:[%s614_s1 + $0x18] sm:$0xff]  ;;  %v21_v2 = vld [vmem:[%s614_s1] sm:$0xff]  ;;  %129 = vmatprep.mubr.f32.mxu0 %v377_v3 }
   0x2   :  { %v308_v4 = vpack.c.bf16 %v24_v1, %v22_v0  ;;  %v23_v5 = vld [vmem:[%s614_s1 + $0x10] sm:$0xff]  ;;  %v26_v6 = vld [vmem:[%s614_s1 + $0x28] sm:$0xff]  ;;  %v28_v7 = vld [vmem:[%s614_s1 + $0x38] sm:$0xff] }
   0x3   :  { %v310_v8 = vpack.c.bf16 %v23_v5, %v21_v2  ;;  %v312_v9 = vpack.c.bf16 %v28_v7, %v26_v6  ;;  %v25_v10 = vld [vmem:[%s614_s1 + $0x20] sm:$0xff]  ;;  %v27_v11 = vld [vmem:[%s614_s1 + $0x30] sm:$0xff]  ;;  %v30_v12 = vld [vmem:[%s614_s1 + $0x48] sm:$0xff] }
   0x4   :  { %309 = vmatprep.subr.bf16.mxu0 %v308_v4  ;;  %v32_v13 = vld [vmem:[%s614_s1 + $0x58] sm:$0xff]  ;;  %v314_v14 = vpack.c.bf16 %v27_v11, %v25_v10  ;;  %v29_v16 = vld [vmem:[%s614_s1 + $0x40] sm:$0xff]  ;;  %v31_v17 = vld [vmem:[%s614_s1 + $0x50] sm:$0xff] }
   0x5   :  { %311 = vmatpush1.bf16.msra.mxu0 %v310_v8  ;;  %v316_v15 = vpack.c.bf16 %v32_v13, %v30_v12  ;;  %v34_v18 = vld [vmem:[%s614_s1 + $0x68] sm:$0xff]  ;;  %v36_v19 = vld [vmem:[%s614_s1 + $0x78] sm:$0xff]  ;;  %v318_v20 = vpack.c.bf16 %v31_v17, %v29_v16  ;;  %v33_v22 = vld [vmem:[%s614_s1 + $0x60] sm:$0xff] }
   0x6   :  { %313 = vmatprep.subr.bf16.mxu0 %v312_v9  ;;  %v320_v21 = vpack.c.bf16 %v36_v19, %v34_v18  ;;  %v35_v23 = vld [vmem:[%s614_s1 + $0x70] sm:$0xff]  ;;  %v38_v24 = vld [vmem:[%s614_s1 + $0x88] sm:$0xff]  ;;  %v40_v25 = vld [vmem:[%s614_s1 + $0x98] sm:$0xff] }
   0x7   :  { %v37_v26 = vld [vmem:[%s614_s1 + $0x80] sm:$0xff]  ;;  %v39_v27 = vld [vmem:[%s614_s1 + $0x90] sm:$0xff]  ;;  %v155_v29 = vld [vmem:[%s615_s3 + $0x88] sm:$0xff]  ;;  %v322_v31 = vpack.c.bf16 %v35_v23, %v33_v22  ;;  %v324_v36 = vpack.c.bf16 %v40_v25, %v38_v24 }
   0x8   :  { %v154_v28 = vld [vmem:[%s615_s3 + $0x80] sm:$0xff]  ;;  %v139_v33 = vld [vmem:[%s615_s3 + $0x8] sm:$0xff]  ;;  %v156_v34 = vld [vmem:[%s615_s3 + $0x90] sm:$0xff]  ;;  %v326_v46 = vpack.c.bf16 %v39_v27, %v37_v26 }
   0x9   :  { %315 = vmatpush1.bf16.msra.mxu0 %v314_v14  ;;  %v138_v30 = vld [vmem:[%s615_s3] sm:$0xff]  ;;  %v340_v32 = vpack.c.bf16 %v155_v29, %v154_v28  ;;  %v157_v35 = vld [vmem:[%s615_s3 + $0x98] sm:$0xff]  ;;  %v140_v39 = vld [vmem:[%s615_s3 + $0x10] sm:$0xff] }
   0xa   :  { %317 = vmatprep.subr.bf16.mxu0 %v316_v15  ;;  %v342_v37 = vpack.c.bf16 %v139_v33, %v138_v30  ;;  %v344_v38 = vpack.c.bf16 %v157_v35, %v156_v34  ;;  %v141_v40 = vld [vmem:[%s615_s3 + $0x18] sm:$0xff]  ;;  %v158_v41 = vld [vmem:[%s615_s3 + $0xa0] sm:$0xff]  ;;  %v42_v42 = vld [vmem:[%s614_s1 + $0xa8] sm:$0xff]  ;;  %v55_v34 = vlaneseq }
   0xb   :  { %v44_v43 = vld [vmem:[%s614_s1 + $0xb8] sm:$0xff]  ;;  %341 = vmatprep.subr.bf16.mxu1 %v340_v32  ;;  %v159_v44 = vld [vmem:[%s615_s3 + $0xa8] sm:$0xff]  ;;  %v346_v45 = vpack.c.bf16 %v141_v40, %v140_v39  ;;  %v41_v47 = vld [vmem:[%s614_s1 + $0xa0] sm:$0xff] }
   0xc   :  { %343 = vmatpush3.bf16.msra.mxu1 %v342_v37  ;;  %v348_v48 = vpack.c.bf16 %v159_v44, %v158_v41  ;;  %v142_v49 = vld [vmem:[%s615_s3 + $0x20] sm:$0xff]  ;;  %v143_v50 = vld [vmem:[%s615_s3 + $0x28] sm:$0xff]  ;;  %v328_v51 = vpack.c.bf16 %v44_v43, %v42_v42  ;;  %v43_v52 = vld [vmem:[%s614_s1 + $0xb0] sm:$0xff]  ;;  %v56_v35 = vshrl.u32 %v55_v34, 7 }
   0xd   :  { %319 = vmatpush1.bf16.msra.mxu0 %v318_v20  ;;  %345 = vmatprep.subr.bf16.mxu1 %v344_v38  ;;  %v160_v53 = vld [vmem:[%s615_s3 + $0xb0] sm:$0xff]  ;;  %v161_v54 = vld [vmem:[%s615_s3 + $0xb8] sm:$0xff]  ;;  %v46_v55 = vld [vmem:[%s614_s1 + $0xc8] sm:$0xff]  ;;  %v350_v57 = vpack.c.bf16 %v143_v50, %v142_v49  ;;  %v330_v58 = vpack.c.bf16 %v43_v52, %v41_v47  ;;  %v378_v47 = vmov 0  }
   0xe   :  { %321 = vmatprep.subr.bf16.mxu0 %v320_v21  ;;  %v48_v56 = vld [vmem:[%s614_s1 + $0xd8] sm:$0xff]  ;;  %v45_v59 = vld [vmem:[%s614_s1 + $0xc0] sm:$0xff]  ;;  %v352_v60 = vpack.c.bf16 %v161_v54, %v160_v53  ;;  %v144_v61 = vld [vmem:[%s615_s3 + $0x30] sm:$0xff]  ;;  %v61_v38 = vsub.s32 1, %v56_v35  ;;  %375 = vset.pattern.permute.xlu1 %v378_v47 }
   0xf   :  { %v145_v62 = vld [vmem:[%s615_s3 + $0x38] sm:$0xff]  ;;  %v332_v63 = vpack.c.bf16 %v48_v56, %v46_v55  ;;  %v47_v0 = vld [vmem:[%s614_s1 + $0xd0] sm:$0xff]  ;;  %v162_v1 = vld [vmem:[%s615_s3 + $0xc0] sm:$0xff]  ;;  %376 = vset.pattern.permute.xlu0 %v378_v47 }
  0x10   :  { %347 = vmatpush3.bf16.msra.mxu1 %v346_v45  ;;  %v163_v2 = vld [vmem:[%s615_s3 + $0xc8] sm:$0xff]  ;;  %v52_v4 = vld [vmem:[%s614_s1 + $0xf8] sm:$0xff]  ;;  %v354_v5 = vpack.c.bf16 %v145_v62, %v144_v61  ;;  %v334_v6 = vpack.c.bf16 %v47_v0, %v45_v59  ;;  %v49_v7 = vld [vmem:[%s614_s1 + $0xe0] sm:$0xff] }
  0x11   :  { %323 = vmatpush1.bf16.msra.mxu0 %v322_v31  ;;  %349 = vmatprep.subr.bf16.mxu1 %v348_v48  ;;  %v50_v3 = vld [vmem:[%s614_s1 + $0xe8] sm:$0xff]  ;;  %v356_v8 = vpack.c.bf16 %v163_v2, %v162_v1  ;;  %v146_v9 = vld [vmem:[%s615_s3 + $0x40] sm:$0xff]  ;;  %v51_v12 = vld [vmem:[%s614_s1 + $0xf0] sm:$0xff] }
  0x12   :  { %325 = vmatprep.subr.bf16.mxu0 %v324_v36  ;;  %v147_v10 = vld [vmem:[%s615_s3 + $0x48] sm:$0xff]  ;;  %v336_v11 = vpack.c.bf16 %v52_v4, %v50_v3  ;;  %v164_v13 = vld [vmem:[%s615_s3 + $0xd0] sm:$0xff]  ;;  %v165_v14 = vld [vmem:[%s615_s3 + $0xd8] sm:$0xff]  ;;  %v338_v16 = vpack.c.bf16 %v51_v12, %v49_v7  ;;  %v57_v36 = vsub.s32 0, %v56_v35 }
  0x13   :  { %v358_v15 = vpack.c.bf16 %v147_v10, %v146_v9  ;;  %v360_v17 = vpack.c.bf16 %v165_v14, %v164_v13  ;;  %v148_v18 = vld [vmem:[%s615_s3 + $0x50] sm:$0xff]  ;;  %v149_v19 = vld [vmem:[%s615_s3 + $0x58] sm:$0xff]  ;;  %v166_v20 = vld [vmem:[%s615_s3 + $0xe0] sm:$0xff] }
  0x14   :  { %351 = vmatpush3.bf16.msra.mxu1 %v350_v57  ;;  %v167_v21 = vld [vmem:[%s615_s3 + $0xe8] sm:$0xff]  ;;  %v362_v22 = vpack.c.bf16 %v149_v19, %v148_v18  ;;  %v20_v23 = vld [vmem:[%s616_s0] sm:$0xff]  ;;  %v168_v28 = vld [vmem:[%s615_s3 + $0xf0] sm:$0xff] }
  0x15   :  { %327 = vmatpush1.bf16.msra.mxu0 %v326_v46  ;;  %353 = vmatprep.subr.bf16.mxu1 %v352_v60  ;;  %v364_v24 = vpack.c.bf16 %v167_v21, %v166_v20  ;;  %v150_v25 = vld [vmem:[%s615_s3 + $0x60] sm:$0xff]  ;;  %v151_v26 = vld [vmem:[%s615_s3 + $0x68] sm:$0xff]  ;;  %v169_v29 = vld [vmem:[%s615_s3 + $0xf8] sm:$0xff] }
  0x16   :  { %329 = vmatprep.subr.bf16.mxu0 %v328_v51  ;;  %v366_v27 = vpack.c.bf16 %v151_v26, %v150_v25  ;;  %v368_v30 = vpack.c.bf16 %v169_v29, %v168_v28  ;;  %v152_v31 = vld [vmem:[%s615_s3 + $0x70] sm:$0xff]  ;;  %v153_v32 = vld [vmem:[%s615_s3 + $0x78] sm:$0xff]  ;;  %v53_v37 = vld [vmem:[%s617_s2] sm:$0x3]  ;;  %s379_s2 = smov 127  }
  0x17   :  { %v370_v33 = vpack.c.bf16 %v153_v32, %v152_v31  ;;  %v58_v39 = vrot.slane %v53_v37, %v57_v36  ;;  %v62_v40 = vrot.slane %v53_v37, %v61_v38  ;;  %v272_v49 = vld [vmem:[%s618_s4] ss:$0 sm:$0xff] }
  0x18   :  { %355 = vmatpush3.bf16.msra.mxu1 %v354_v5 }
  0x19   :  { %331 = vmatpush1.bf16.msra.mxu0 %v330_v58  ;;  %357 = vmatprep.subr.bf16.mxu1 %v356_v8 }
  0x1a   :  { %333 = vmatprep.subr.bf16.mxu0 %v332_v63 }
  0x1c   :  { %359 = vmatpush3.bf16.msra.mxu1 %v358_v15 }
  0x1d   :  { %335 = vmatpush1.bf16.msra.mxu0 %v334_v6  ;;  %361 = vmatprep.subr.bf16.mxu1 %v360_v17 }
  0x1e   :  { %337 = vmatprep.subr.bf16.mxu0 %v336_v11 }
  0x20   :  { %363 = vmatpush3.bf16.msra.mxu1 %v362_v22 }
  0x21   :  { %339 = vmatpush1.bf16.msra.mxu0 %v338_v16  ;;  %365 = vmatprep.subr.bf16.mxu1 %v364_v24 }
  0x24   :  { %130 = vmatmul.mubr.f32.vlgmr.msra.gmra.mrb[0].mxu0 %v20_v23  ;;  %367 = vmatpush3.bf16.msra.mxu1 %v366_v27 }
  0x25   :  { %369 = vmatprep.subr.bf16.mxu1 %v368_v30 }
  0x28   :  { %371 = vmatpush3.bf16.msra.mxu1 %v370_v33 }
  0xf7   :  { %v131_v41 = vpop.f32.mrb[0].mxu0 }
  0xf8   :  { %v132_v42 = vadd.f32 %v131_v41, %v58_v39  ;;  %v133_v43 = vpop.f32.mrb[1].mxu0 }
  0xf9   :  { %v134_v44 = vadd.f32 %v133_v43, %v62_v40 }
  0xfa   :  { %v136_v46 = vmax.f32 %v132_v42, 0.0 }
  0xfb   :  { %v137_v45 = vmax.f32 %v134_v44, 0.0 }
  0xfd   :  { %241 = vmatprep.mubr.f32.mxu1 %v137_v45 }
  0xfe   :  { %242 = vmatmul.mubr.f32.vlgmr.msra.gmra.mrb[0].mxu1 %v136_v46 }
 0x1d1   :  { %v305_v48 = vpop.f32.mrb[0].mxu1 }
 0x1d2   :  { %v306_v50 = vpop.f32.mrb[1].mxu1 }
 0x1d3   :  { %v307_v51 = vadd.f32 %v306_v50, %v305_v48 }
 0x1d5   :  { %v244_v52 = vadd.f32 %v307_v51, %v272_v49 }
 0x1d7   :  { %259 = vperm.xlu1 %375, %v244_v52   ;;  %248 = vrot.lane.b32.xlu0 %v244_v52, %s379_s2 }
 0x249   :  { %v249_v53 = vpop.permute.xlu0 %248 }
 0x24a   :  { %v252_v54 = vsel %vm251_vm0, %v249_v53, 0.0 }
 0x24b   :  { %253 = vadd.xlane.f32.xlu0 %v252_v54 }
 0x256   :  { %v260_v58 = vpop.permute.xlu1 %259 }
 0x2d8   :  { %v254_v55 = vpop.xlane.xlu0 %253 }
 0x2d9   :  { %v256_v56 = vmul.f32 0.25, %v254_v55 }
 0x2db   :  { %v257_v57 = vsub.f32 %v244_v52, %v256_v56 }
 0x2dd   :  { %v262_v59 = vadd.f32 %v260_v58, %v257_v57 }
 0x2df   :  { %264 = vrot.lane.b32.xlu1 %v262_v59, %s379_s2 }
 0x351   :  { %v265_v60 = vpop.permute.xlu1 %264 }
 0x352   :  { %267 = vst.msk [vmem:[%s619_s5] sm:$0xff] %vm251_vm0, %v265_v60 }

</bundles_post_ra>
